<compile_context>
chip_gen: v7x
topology: tpu7x:2x2x1
jax: 0.10.0
libtpu: 0.0.40
codegen_flags: <defaults>
</compile_context>

<pallas_src>
import numpy as np
import jax
import jax.numpy as jnp
from jax import lax
from jax.experimental import pallas as pl
from jax.experimental.pallas import tpu as pltpu

_MiB = 1024 * 1024


# --------------------------------------------------------------------------- #
# Kernel factory
# --------------------------------------------------------------------------- #
def _make_kernel(*, ragged, f_total, tk, direct):
    """Build the (j, k) grid-step kernel.

    Refs (in order):
      x_ref:   (B, tk)    activation tile
      w_ref:   (tn, tk)   weight_v tile (row-major, contracted over last axis)
      gb_ref:  (2, tn)    packed [g; bias] (f32)
      o_ref:   (B, tn)    output block (resident across the K axis)
      acc_ref: (B, tn)    f32 accumulator (== o_ref on the f32 fast path)
      ssq_ref: (1, tn)    f32 accumulator for sum_k v[n,k]^2 (weight-norm row norm)
    """

    def body(x_ref, w_ref, gb_ref, o_ref, acc_ref, ssq_ref):
        k = pl.program_id(1)

        @pl.when(k == 0)
        def _init():
            acc_ref[...] = jnp.zeros_like(acc_ref)
            ssq_ref[...] = jnp.zeros_like(ssq_ref)

        x = x_ref[...]
        w = w_ref[...]

        if ragged:
            # Last K tile extends past F: zero-mask BOTH operands' tails before
            # any use (garbage VMEM may be NaN/Inf).  A handful of VPU ops per
            # tile, hidden under the weight DMA.
            col_w = lax.broadcasted_iota(jnp.int32, w.shape, 1) + k * tk
            w = jnp.where(col_w < f_total, w, jnp.zeros_like(w))
            col_x = lax.broadcasted_iota(jnp.int32, x.shape, 1) + k * tk
            x = jnp.where(col_x < f_total, x, jnp.zeros_like(x))

        # Low-precision weight streaming: match x to the streamed weight dtype,
        # keep the accumulation in f32.
        if x.dtype != w.dtype:
            x = x.astype(w.dtype)

        # Partial y: (B, tn) = x (B, tk) contracted with w (tn, tk) over K.
        acc_ref[...] += lax.dot_general(
            x, w,
            dimension_numbers=(((1,), (1,)), ((), ())),
            preferred_element_type=jnp.float32,
        )

        # Partial row sum-of-squares of v, produced directly in lane-dense
        # (1, tn) layout via a tiny ones @ (v*v).T MXU matmul, so the weight is
        # read from HBM only once for both the matmul and the weight-norm.
        # Square in the native weight dtype (no f32 upcast temp).
        ones = jnp.ones((1, w.shape[1]), dtype=w.dtype)
        ssq_ref[...] += lax.dot_general(
            ones, w * w,
            dimension_numbers=(((1,), (1,)), ((), ())),
            preferred_element_type=jnp.float32,
        )

        @pl.when(k == pl.num_programs(1) - 1)
        def _finalize():
            gb = gb_ref[...].astype(jnp.float32)
            g = gb[0:1, :]
            b = gb[1:2, :]
            # scale = g / ||v||_row ; rsqrt(0) -> inf, same as torch weight_norm
            # dividing by a zero row norm.
            scale = g * lax.rsqrt(ssq_ref[...])
            o_ref[...] = (acc_ref[...] * scale + b).astype(o_ref.dtype)

    if direct:
        # f32 output: accumulate straight into the resident output block.
        def kernel(x_ref, w_ref, gb_ref, o_ref, ssq_ref):
            body(x_ref, w_ref, gb_ref, o_ref, o_ref, ssq_ref)
    else:
        # Non-f32 output: accumulate in an f32 scratch, cast once at the end.
        def kernel(x_ref, w_ref, gb_ref, o_ref, acc_ref, ssq_ref):
            body(x_ref, w_ref, gb_ref, o_ref, acc_ref, ssq_ref)

    return kernel


# --------------------------------------------------------------------------- #
# Tiling heuristics
# --------------------------------------------------------------------------- #
def _round_up(x, m):
    return ((x + m - 1) // m) * m


def _vmem_capacity_bytes():
    try:
        return int(pltpu.get_tpu_info().vmem_capacity_bytes)
    except Exception:
        return 64 * _MiB  # conservative (v7x-sized) fallback


def _pick_tiles(B, F, N, x_bytes, w_bytes, out_bytes, needs_acc):
    """Choose (tn, tk, n_k, w_bufs, vmem_limit) with full VMEM-footprint accounting."""
    vmem_cap = _vmem_capacity_bytes()
    if vmem_cap >= 96 * _MiB:          # v5e / v6e: 128 MiB physical VMEM
        tile_budget = 44 * _MiB
        vmem_limit = 100 * _MiB
    else:                              # v7x: 64 MiB physical (or unknown -> safe)
        tile_budget = 18 * _MiB
        vmem_limit = 40 * _MiB

    b_sub = _round_up(B, 8)            # sublane-padded batch rows in VMEM

    def footprint(tn, tk, w_bufs):
        tn_lane = _round_up(tn, 128)
        tn_sub = _round_up(tn, 8)
        tk_lane = _round_up(tk, 128)
        fp = 0
        fp += 2 * b_sub * tk_lane * x_bytes           # x tiles (double-buffered)
        fp += w_bufs * tn_sub * tk_lane * w_bytes     # weight tiles
        fp += tn_sub * tk_lane * w_bytes              # transient w*w product
        fp += 2 * 8 * tn_lane * 4                     # packed (2, tn) g/bias blocks
        fp += 2 * b_sub * tn_lane * out_bytes         # output block (double-buffered)
        if needs_acc:
            fp += b_sub * tn_lane * 4                 # f32 accumulator scratch
        fp += 8 * tn_lane * 4                         # ssq scratch
        return fp

    # ---- tn: output-dim tile ------------------------------------------------
    if N % 128 == 0 and N >= 256:
        # Lane-dense divisors of N, largest first, keeping >= 2 slices along the
        # "parallel" N axis (both v7x TensorCores busy) and >= a minimal K tile
        # within the budget.
        cands = [t for t in (1024, 512, 256, 128) if N % t == 0 and N // t >= 2]
        if not cands:
            cands = [128]
        tn = next((t for t in cands if footprint(t, 128, 2) <= tile_budget), cands[-1])
    else:
        tn = N                          # single N block (masked stores if N < 128)

    # ---- tk: contraction-axis tile -------------------------------------------
    if footprint(tn, F, 2) <= tile_budget:
        return tn, F, 1, 2, vmem_limit  # whole F in one K step

    fixed = footprint(tn, 0, 2)
    per_col128 = footprint(tn, 128, 2) - fixed        # bytes per 128 K columns
    cap = max(1, (tile_budget - fixed) // per_col128) * 128
    cap = max(128, cap)
    n_k = -(-F // cap)                                # cdiv(F, cap)
    tk = _round_up(-(-F // n_k), 128)                 # balance the K tiles

    # Triple-buffer the weight stream when the K loop is long and there is
    # confirmed VMEM headroom (per-step compute is tiny vs. the weight DMA).
    w_bufs = 3 if (n_k >= 4 and footprint(tn, tk, 3) <= tile_budget) else 2
    return tn, tk, n_k, w_bufs, vmem_limit


# --------------------------------------------------------------------------- #
# Wrapper
# --------------------------------------------------------------------------- #
def as_feature_map_down(x, weight_v, weight_g, bias, *, weight_stream_dtype=None):
    """Forward pass of AsFeatureMap_down.

    x:        (B, *input_shape)
    weight_v: (N, F)       weight-norm direction parameter (F = prod(input_shape))
    weight_g: (N,) / (N,1) weight-norm magnitude parameter (dim=0)
    bias:     (N,)
    weight_stream_dtype: optionally stream the weight in a lower precision
        (e.g. jnp.bfloat16).  Changes numerics; only worthwhile if the cast is
        amortized (params already stored low-precision).  Default: exact.
    returns   (B, N)
    """
    B = x.shape[0]
    x_flat = x.reshape(B, -1)                 # same flatten order as torch .view
    F = x_flat.shape[1]
    N = weight_v.shape[0]
    assert weight_v.shape == (N, F)

    if weight_stream_dtype is not None and weight_v.dtype != weight_stream_dtype:
        weight_v = weight_v.astype(weight_stream_dtype)

    out_dtype = x.dtype
    x_bytes = jnp.dtype(x_flat.dtype).itemsize
    w_bytes = jnp.dtype(weight_v.dtype).itemsize
    out_bytes = jnp.dtype(out_dtype).itemsize
    f32_out = out_dtype == jnp.float32

    tn, tk, n_k, w_bufs, vmem_limit = _pick_tiles(
        B, F, N, x_bytes, w_bytes, out_bytes, needs_acc=not f32_out)
    ragged = (n_k * tk != F)                  # last K tile extends past F

    # Pack g and bias into one (2, N) f32 block: one small DMA per j instead of two.
    gb = jnp.concatenate(
        [weight_g.astype(jnp.float32).reshape(1, N),
         bias.astype(jnp.float32).reshape(1, N)], axis=0)

    grid = (N // tn, n_k)                     # (parallel over N, reduction over K)

    if w_bufs == 3:
        w_spec = pl.BlockSpec((tn, tk), lambda j, k: (j, k),
                              pipeline_mode=pl.Buffered(3))
    else:
        w_spec = pl.BlockSpec((tn, tk), lambda j, k: (j, k))

    scratch_shapes = [pltpu.VMEM((1, tn), jnp.float32)]          # sum(v^2) per row
    if not f32_out:
        scratch_shapes = [pltpu.VMEM((B, tn), jnp.float32)] + scratch_shapes

    kernel = _make_kernel(ragged=ragged, f_total=F, tk=tk, direct=f32_out)

    return pl.pallas_call(
        kernel,
        out_shape=jax.ShapeDtypeStruct((B, N), out_dtype),
        grid_spec=pltpu.PrefetchScalarGridSpec(
            num_scalar_prefetch=0,
            grid=grid,
            in_specs=[
                pl.BlockSpec((B, tk), lambda j, k: (0, k)),    # x tile
                w_spec,                                        # weight_v tile (N, F)
                pl.BlockSpec((2, tn), lambda j, k: (0, j)),    # packed [g; bias]
            ],
            out_specs=pl.BlockSpec((B, tn), lambda j, k: (0, j)),
            scratch_shapes=scratch_shapes,
        ),
        compiler_params=pltpu.CompilerParams(
            dimension_semantics=("parallel", "arbitrary"),
            vmem_limit_bytes=vmem_limit,
        ),
    )(x_flat, weight_v, gb)


# --------------------------------------------------------------------------- #
# Self-test
# --------------------------------------------------------------------------- #
if __name__ == "__main__":
    # Small shapes consistent with the module: input_shape=(4,16,16), target_dim=32.
    B = 2
    input_shape = (4, 16, 16)
    F = int(np.prod(input_shape))   # 1024
    N = 32                          # target_dim

    key = jax.random.PRNGKey(0)
    kx, kv, kg, kb = jax.random.split(key, 4)

    x = jax.random.normal(kx, (B,) + input_shape, dtype=jnp.float32)
    # Module parameter shapes: Linear(F, N) with weight_norm dim=0 ->
    # weight_v (N, F), weight_g (N,), bias (N,).
    weight_v = jax.random.normal(kv, (N, F), dtype=jnp.float32) * 0.05
    weight_g = jax.random.uniform(kg, (N,), dtype=jnp.float32, minval=0.5, maxval=1.5)
    bias = jax.random.normal(kb, (N,), dtype=jnp.float32) * 0.1

    y = jax.block_until_ready(as_feature_map_down(x, weight_v, weight_g, bias))

    # Pure-JAX reference (same math as the PyTorch forward).
    x_flat = x.reshape(B, -1)
    W = weight_g[:, None] * weight_v / jnp.linalg.norm(weight_v, axis=1, keepdims=True)
    y_ref = x_flat @ W.T + bias

    np.testing.assert_allclose(np.asarray(y), np.asarray(y_ref), rtol=1e-4, atol=2e-5)

    # Optional bandwidth-saving path: bf16 weight streaming (numerics change, looser tol).
    y_bf16 = jax.block_until_ready(
        as_feature_map_down(x, weight_v, weight_g, bias,
                            weight_stream_dtype=jnp.bfloat16))
    np.testing.assert_allclose(np.asarray(y_bf16), np.asarray(y_ref),
                               rtol=5e-2, atol=5e-2)

    print("KERNEL_OK")
</pallas_src>

<mosaic_0001>
module attributes {stable_mosaic.version = 11 : i64} {
  func.func @kernel(%arg0: i32, %arg1: i32, %arg2: memref<2x1024xf32, #tpu.memory_space<vmem>>, %arg3: memref<32x1024xf32, #tpu.memory_space<vmem>>, %arg4: memref<2x32xf32, #tpu.memory_space<vmem>>, %arg5: memref<2x32xf32, #tpu.memory_space<vmem>>, %arg6: memref<1x32xf32, #tpu.memory_space<vmem>>) attributes {dimension_semantics = [#tpu.dimension_semantics<parallel>, #tpu.dimension_semantics<arbitrary>], iteration_bounds = array<i64: 1, 1>, scalar_prefetch = 0 : i64, scratch_operands = 1 : i64, tpu.core_type = #tpu.core_type<tc>, window_params = [{transform_indices = @transform_0, window_bounds = array<i64: 2, 1024>}, {transform_indices = @transform_1, window_bounds = array<i64: 32, 1024>}, {transform_indices = @transform_2, window_bounds = array<i64: 2, 32>}, {transform_indices = @transform_3, window_bounds = array<i64: 2, 32>}]} {
    %c0_i32 = arith.constant 0 : i32
    %0 = arith.cmpi eq, %arg1, %c0_i32 : i32
    %1 = arith.extui %0 : i1 to i32
    %c0_i32_0 = arith.constant 0 : i32
    %2 = arith.cmpi ne, %1, %c0_i32_0 : i32
    scf.if %2 {
      %cst_16 = arith.constant 0.000000e+00 : f32
      %18 = vector.broadcast %cst_16 : f32 to vector<2x32xf32>
      %c0_17 = arith.constant 0 : index
      %c0_18 = arith.constant 0 : index
      %19 = vector.load %arg5[%c0_17, %c0_18] : memref<2x32xf32, #tpu.memory_space<vmem>>, vector<2x32xf32>
      tpu.vector_store %arg5[%c0_17, %c0_18], %18 {strides = array<i32>} : memref<2x32xf32, #tpu.memory_space<vmem>>, vector<2x32xf32>,
      %cst_19 = arith.constant 0.000000e+00 : f32
      %20 = vector.broadcast %cst_19 : f32 to vector<1x32xf32>
      %c0_20 = arith.constant 0 : index
      %c0_21 = arith.constant 0 : index
      %21 = vector.load %arg6[%c0_20, %c0_21] : memref<1x32xf32, #tpu.memory_space<vmem>>, vector<1x32xf32>
      tpu.vector_store %arg6[%c0_20, %c0_21], %20 {strides = array<i32>} : memref<1x32xf32, #tpu.memory_space<vmem>>, vector<1x32xf32>,
    } else {
    }
    %c0 = arith.constant 0 : index
    %c0_1 = arith.constant 0 : index
    %3 = vector.load %arg2[%c0, %c0_1] : memref<2x1024xf32, #tpu.memory_space<vmem>>, vector<2x1024xf32>
    %c0_2 = arith.constant 0 : index
    %c0_3 = arith.constant 0 : index
    %4 = vector.load %arg3[%c0_2, %c0_3] : memref<32x1024xf32, #tpu.memory_space<vmem>>, vector<32x1024xf32>
    %c0_4 = arith.constant 0 : index
    %c0_5 = arith.constant 0 : index
    %5 = vector.load %arg5[%c0_4, %c0_5] : memref<2x32xf32, #tpu.memory_space<vmem>>, vector<2x32xf32>
    %cst = arith.constant dense<0.000000e+00> : vector<2x32xf32>
    %6 = tpu.matmul %3, %4, %cst {dimension_numbers = #tpu.dot_dimension_numbers<[1], [1], [0], [0], [0, 0, 1, 0], [], []>} : vector<2x1024xf32>, vector<32x1024xf32>, vector<2x32xf32> -> vector<2x32xf32>
    %7 = arith.addf %5, %6 : vector<2x32xf32>
    %c0_6 = arith.constant 0 : index
    %c0_7 = arith.constant 0 : index
    %8 = vector.load %arg5[%c0_6, %c0_7] : memref<2x32xf32, #tpu.memory_space<vmem>>, vector<2x32xf32>
    tpu.vector_store %arg5[%c0_6, %c0_7], %7 {strides = array<i32>} : memref<2x32xf32, #tpu.memory_space<vmem>>, vector<2x32xf32>,
    %cst_8 = arith.constant 1.000000e+00 : f32
    %9 = vector.broadcast %cst_8 : f32 to vector<1x1024xf32>
    %c0_9 = arith.constant 0 : index
    %c0_10 = arith.constant 0 : index
    %10 = vector.load %arg6[%c0_9, %c0_10] : memref<1x32xf32, #tpu.memory_space<vmem>>, vector<1x32xf32>
    %11 = arith.mulf %4, %4 : vector<32x1024xf32>
    %cst_11 = arith.constant dense<0.000000e+00> : vector<1x32xf32>
    %12 = tpu.matmul %9, %11, %cst_11 {dimension_numbers = #tpu.dot_dimension_numbers<[1], [1], [0], [0], [0, 0, 1, 0], [], []>} : vector<1x1024xf32>, vector<32x1024xf32>, vector<1x32xf32> -> vector<1x32xf32>
    %13 = arith.addf %10, %12 : vector<1x32xf32>
    %c0_12 = arith.constant 0 : index
    %c0_13 = arith.constant 0 : index
    %14 = vector.load %arg6[%c0_12, %c0_13] : memref<1x32xf32, #tpu.memory_space<vmem>>, vector<1x32xf32>
    tpu.vector_store %arg6[%c0_12, %c0_13], %13 {strides = array<i32>} : memref<1x32xf32, #tpu.memory_space<vmem>>, vector<1x32xf32>,
    %c0_i32_14 = arith.constant 0 : i32
    %15 = arith.cmpi eq, %arg1, %c0_i32_14 : i32
    %16 = arith.extui %15 : i1 to i32
    %c0_i32_15 = arith.constant 0 : i32
    %17 = arith.cmpi ne, %16, %c0_i32_15 : i32
    scf.if %17 {
      %c0_16 = arith.constant 0 : index
      %c0_17 = arith.constant 0 : index
      %18 = vector.load %arg4[%c0_16, %c0_17] : memref<2x32xf32, #tpu.memory_space<vmem>>, vector<2x32xf32>
      %19 = vector.extract_strided_slice %18 {offsets = [0, 0], sizes = [1, 32], strides = [1, 1]} : vector<2x32xf32> to vector<1x32xf32>
      %20 = vector.extract_strided_slice %18 {offsets = [1, 0], sizes = [1, 32], strides = [1, 1]} : vector<2x32xf32> to vector<1x32xf32>
      %c0_18 = arith.constant 0 : index
      %c0_19 = arith.constant 0 : index
      %21 = vector.load %arg6[%c0_18, %c0_19] : memref<1x32xf32, #tpu.memory_space<vmem>>, vector<1x32xf32>
      %22 = math.rsqrt %21 : vector<1x32xf32>
      %23 = arith.mulf %19, %22 : vector<1x32xf32>
      %c0_20 = arith.constant 0 : index
      %c0_21 = arith.constant 0 : index
      %24 = vector.load %arg5[%c0_20, %c0_21] : memref<2x32xf32, #tpu.memory_space<vmem>>, vector<2x32xf32>
      %25 = vector.broadcast %23 : vector<1x32xf32> to vector<2x32xf32>
      %26 = arith.mulf %24, %25 : vector<2x32xf32>
      %27 = vector.broadcast %20 : vector<1x32xf32> to vector<2x32xf32>
      %28 = arith.addf %26, %27 : vector<2x32xf32>
      %c0_22 = arith.constant 0 : index
      %c0_23 = arith.constant 0 : index
      %29 = vector.load %arg5[%c0_22, %c0_23] : memref<2x32xf32, #tpu.memory_space<vmem>>, vector<2x32xf32>
      tpu.vector_store %arg5[%c0_22, %c0_23], %28 {strides = array<i32>} : memref<2x32xf32, #tpu.memory_space<vmem>>, vector<2x32xf32>,
    } else {
    }
    return
  }
  func.func @transform_0(%arg0: i32, %arg1: i32) -> (i32, i32) {
    %c0_i32 = arith.constant 0 : i32
    %c0_i32_0 = arith.constant 0 : i32
    return %c0_i32, %arg1 : i32, i32
  }
  func.func @transform_1(%arg0: i32, %arg1: i32) -> (i32, i32) {
    %c0_i32 = arith.constant 0 : i32
    return %arg0, %arg1 : i32, i32
  }
  func.func @transform_2(%arg0: i32, %arg1: i32) -> (i32, i32) {
    %c0_i32 = arith.constant 0 : i32
    %c0_i32_0 = arith.constant 0 : i32
    return %c0_i32, %arg0 : i32, i32
  }
  func.func @transform_3(%arg0: i32, %arg1: i32) -> (i32, i32) {
    %c0_i32 = arith.constant 0 : i32
    %c0_i32_0 = arith.constant 0 : i32
    return %c0_i32, %arg0 : i32, i32
  }
}

</mosaic_0001>

<bundles_post_ra>
// kernel: tpu_custom_call.1
= control target key start
LH: loop header
LB: loop body
LE: loop exit
PB: predicated region body
PF: predicated region fallthrough
CT: control target
= control target key end

     0   :  { %8 = vsyncpa [#allocation4], 0  ;;  %s1154_s0 = inlined_call_operand.hbm [shape: f32[2,1024], index: 0, kind: input, shape index: {}]   ;;  %s1155_s1 = inlined_call_operand.hbm [shape: f32[32,1024], index: 1, kind: input, shape index: {}]   ;;  %s1156_s2 = inlined_call_operand.vmem [shape: f32[2,32], index: 2, kind: input, shape index: {}]   ;;  %s1157_s3 = inlined_call_operand.hbm [shape: f32[2,32], index: 3, kind: output, shape index: {}]  }
   0x1   :  { %9 = vsyncpa [#allocation7], 0 }
   0x2   :  { %10 = vsyncpa [#allocation5], 0  ;;  %s910_s12 = smov [#allocation3]   ;;  %s911_s14 = smov [#allocation6]  }
   0x3   :  { %s17_s13 = sshll.u32 %s910_s12, 4  ;;  %s26_s15 = sshll.u32 %s911_s14, 4  ;;  %s18_s13 = int_to_ptr.vmem [resolvable:$true] %s17_s13  ;;  %s938_s15 = int_to_ptr.vmem [resolvable:$true] %s26_s15 }
   0x4   :  { %s838_s18 = scalar_lea.hbm %s1154_s0, 256 }
   0x5   :  { %p839_p0 = scmp.ne.s32.totalorder %s1154_s0, %s838_s18  ;;  %p842_p1 = scmp.lt.u32.totalorder %s838_s18, %s1154_s0 }
   0x7   :  { %p844_p2 = pnand %p842_p1, %p839_p0 }
   0x9   :  { %847 = shalt.err (!%p844_p2)
}
   0xa   :  { %s848_s23 = scalar_lea.vmem %s18_s13, 256  ;;  %p853_p4 = scmp.lt.s32.totalorder %s18_s13, %s18_s13 }
   0xb   :  { %p849_p3 = scmp.ne.s32.totalorder %s18_s13, %s848_s23  ;;  %p854_p5 = scmp.lt.s32.totalorder %s848_s23, %s848_s23 }
   0xd   :  { %p855_p6 = por %p854_p5, %p853_p4 }
   0xf   :  { %p856_p7 = pnand %p855_p6, %p849_p3 }
  0x11   :  { %859 = shalt.err (!%p856_p7)
}
  0x12   :  { %20 = dma.hbm_to_vmem [thread:$0]  %s1154_s0, 256, %s18_s13, [#allocation4]  }
  0x13   :  { %s860_s28 = scalar_lea.hbm %s1155_s1, 4096 }
  0x14   :  { %p861_p8 = scmp.ne.s32.totalorder %s1155_s1, %s860_s28  ;;  %p864_p9 = scmp.lt.u32.totalorder %s860_s28, %s1155_s1 }
  0x16   :  { %p866_p10 = pnand %p864_p9, %p861_p8 }
  0x18   :  { %869 = shalt.err (!%p866_p10)
}
  0x19   :  { %s870_s6 = scalar_lea.vmem %s938_s15, 4096  ;;  %p875_p12 = scmp.lt.s32.totalorder %s938_s15, %s938_s15 }
  0x1a   :  { %p871_p11 = scmp.ne.s32.totalorder %s938_s15, %s870_s6  ;;  %p876_p13 = scmp.lt.s32.totalorder %s870_s6, %s870_s6 }
  0x1c   :  { %p877_p0 = por %p876_p13, %p875_p12 }
  0x1e   :  { %p878_p1 = pnand %p877_p0, %p871_p11 }
  0x20   :  { %881 = shalt.err (!%p878_p1)
}
  0x21   :  { %s912_s0 = smov 1024   ;;  %s913_s7 = smov 64  }
  0x22   :  { %32 = dma.hbm_to_vmem [thread:$0]  %s1155_s1, 4096, %s938_s15, [#allocation7], %s912_s0, %s912_s0, %s913_s7  }
  0x23   :  { %904 = dma.done.wait [#allocation4], 256  }
  0x24   :  { %905 = vsyncadd [#allocation4], 4294967040 }
  0x25   :  { %906 = dma.done.wait [#allocation7], 4096  }
  0x26   :  { %907 = vsyncadd [#allocation7], 4294963200  ;;  %v914_v0 = vmov 1983009808   ;;  %v90_v2 = vlaneseq  ;;  %v971_v5 = vld [vmem:[#allocation6 + $0x8] sm:$0xff]  ;;  %v975_v7 = vld [vmem:[#allocation6] sm:$0xff] }
  0x27   :  { %v88_v1 = vunpack.c.l.s4 %v914_v0  ;;  %v973_v6 = vld [vmem:[#allocation6 + $0x48] sm:$0xff]  ;;  %v979_v9 = vld [vmem:[#allocation6 + $0x40] sm:$0xff]  ;;  %v981_v10 = vld [vmem:[#allocation6 + $0x18] sm:$0xff]  ;;  %v413_v60 = vmul.f32 %v971_v5, %v971_v5  ;;  %vm45_vm0 = vcmask 254976   ;;  %vm47_vm1 = vcmask 253952   ;;  %s917_s11 = smov [#allocation8]  }
  0x28   :  { %v969_v4 = vshrl.u32 %v90_v2, 7  ;;  %v762_v8 = vpack.c.bf16 %v973_v6, %v971_v5  ;;  %v983_v11 = vld [vmem:[#allocation6 + $0x58] sm:$0xff]  ;;  %v764_v12 = vpack.c.bf16 %v979_v9, %v975_v7  ;;  %v989_v14 = vld [vmem:[#allocation6 + $0x10] sm:$0xff]  ;;  %v993_v16 = vld [vmem:[#allocation6 + $0x88] sm:$0xff]  ;;  %v421_v61 = vmul.f32 %v973_v6, %v973_v6  ;;  %s752_s12 = sshll.u32 %s917_s11, 4  ;;  %s753_s12 = int_to_ptr.vmem [resolvable:$true] %s752_s12 }
  0x29   :  { %v89_v3 = vunpack.c.0.s8 %v88_v1  ;;  %v770_v13 = vpack.c.bf16 %v983_v11, %v981_v10  ;;  %v991_v15 = vld [vmem:[#allocation6 + $0x50] sm:$0xff]  ;;  %v998_v19 = vld [vmem:[#allocation6 + $0xc8] sm:$0xff]  ;;  %v1002_v21 = vld [vmem:[#allocation6 + $0x98] sm:$0xff]  ;;  %v415_v0 = vmul.f32 %v981_v10, %v981_v10  ;;  %v423_v1 = vmul.f32 %v983_v11, %v983_v11  ;;  %s882_s13 = scalar_lea.vmem %s753_s12, 32  ;;  %p887_p3 = scmp.lt.s32.totalorder %s753_s12, %s753_s12 }
  0x2a   :  { %763 = vmatprep.subr.bf16.mxu0 %v762_v8  ;;  %v772_v18 = vpack.c.bf16 %v991_v15, %v989_v14  ;;  %v766_v20 = vpack.c.bf16 %v998_v19, %v993_v16  ;;  %v1004_v22 = vld [vmem:[#allocation6 + $0xd8] sm:$0xff]  ;;  %v1006_v23 = vld [vmem:[#allocation6 + $0x80] sm:$0xff]  ;;  %v49_v26 = vld [vmem:[#allocation3] sm:$0xff]  ;;  %v794_v8 = vpack.c.bf16 %v421_v61, %v413_v60  ;;  %v412_v10 = vmul.f32 %v975_v7, %v975_v7  ;;  %p883_p2 = scmp.ne.s32.totalorder %s753_s12, %s882_s13  ;;  %p888_p4 = scmp.lt.s32.totalorder %s882_s13, %s882_s13 }
  0x2b   :  { %v92_v17 = vsub.s32 %v89_v3, %v969_v4  ;;  %765 = vmatpush1.bf16.xpose.msra.mxu0 %v764_v12  ;;  %771 = vmatprep.subr.bf16.mxu1 %v770_v13  ;;  %v1008_v24 = vld [vmem:[#allocation6 + $0xc0] sm:$0xff]  ;;  %v774_v25 = vpack.c.bf16 %v1004_v22, %v1002_v21  ;;  %v1012_v27 = vld [vmem:[#allocation6 + $0x90] sm:$0xff]  ;;  %v1016_v30 = vld [vmem:[#allocation6 + $0x28] sm:$0xff]  ;;  %v86_v31 = vcombine.high %v49_v26, %v49_v26 }
  0x2c   :  { %773 = vmatpush1.bf16.xpose.msra.mxu1 %v772_v18  ;;  %767 = vmatprep.subr.bf16.mxu0 %v766_v20  ;;  %v1014_v28 = vld [vmem:[#allocation6 + $0xd0] sm:$0xff]  ;;  %v1018_v32 = vld [vmem:[#allocation6 + $0x68] sm:$0xff]  ;;  %v1020_v33 = vld [vmem:[#allocation6 + $0x38] sm:$0xff]  ;;  %v768_v35 = vpack.c.bf16 %v1008_v24, %v1006_v23  ;;  %v802_v12 = vpack.c.bf16 %v423_v1, %v415_v0  ;;  %v420_v11 = vmul.f32 %v979_v9, %v979_v9  ;;  %p889_p5 = por %p888_p4, %p887_p3 }
  0x2d   :  { %v93_v29 = vrot.slane %v49_v26, %v92_v17  ;;  %775 = vmatprep.subr.bf16.mxu1 %v774_v25  ;;  %v1022_v34 = vld [vmem:[#allocation6 + $0x78] sm:$0xff]  ;;  %v776_v37 = vpack.c.bf16 %v1014_v28, %v1012_v27  ;;  %v100_v38 = vrot.slane %v86_v31, %v92_v17  ;;  %v778_v39 = vpack.c.bf16 %v1018_v32, %v1016_v30  ;;  %v1032_v44 = vld [vmem:[#allocation6 + $0x20] sm:$0xff]  ;;  %v1036_v46 = vld [vmem:[#allocation6 + $0x30] sm:$0xff] }
  0x2e   :  { %v786_v40 = vpack.c.bf16 %v1022_v34, %v1020_v33  ;;  %v50_v42 = vld [vmem:[#allocation3 + $0x8] sm:$0xff]  ;;  %v1034_v45 = vld [vmem:[#allocation6 + $0x60] sm:$0xff]  ;;  %v1038_v47 = vld [vmem:[#allocation6 + $0x70] sm:$0xff]  ;;  %v414_v13 = vmul.f32 %v989_v14, %v989_v14  ;;  %v429_v18 = vmul.f32 %v993_v16, %v993_v16  ;;  %v437_v20 = vmul.f32 %v998_v19, %v998_v19  ;;  %p890_p6 = pnand %p889_p5, %p883_p2 }
  0x2f   :  { %v101_v36 = vcombine.high %v93_v29, %v93_v29  ;;  %v102_v41 = vcombine.high %v100_v38, %v100_v38  ;;  %v103_v43 = vcombine.high %v50_v42, %v50_v42  ;;  %v1040_v48 = vld [vmem:[#allocation6 + $0xa8] sm:$0xff]  ;;  %v110_v50 = vrot.slane %v50_v42, %v92_v17  ;;  %v1044_v51 = vld [vmem:[#allocation6 + $0xb8] sm:$0xff]  ;;  %v1060_v62 = vld [vmem:[#allocation6 + $0xa0] sm:$0xff] }
  0x30   :  { %v1042_v49 = vld [vmem:[#allocation6 + $0xe8] sm:$0xff]  ;;  %v1046_v52 = vld [vmem:[#allocation6 + $0xf8] sm:$0xff]  ;;  %v780_v54 = vpack.c.bf16 %v1034_v45, %v1032_v44  ;;  %v788_v55 = vpack.c.bf16 %v1038_v47, %v1036_v46  ;;  %v1062_v63 = vld [vmem:[#allocation6 + $0xe0] sm:$0xff]  ;;  %v431_v7 = vmul.f32 %v1002_v21, %v1002_v21  ;;  %v439_v9 = vmul.f32 %v1004_v22, %v1004_v22 }
  0x31   :  { %192 = vmatprep.mubr.f32.mxu0 %v101_v36  ;;  %262 = vmatprep.mubr.f32.mxu1 %v102_v41  ;;  %v117_v53 = vrot.slane %v103_v43, %v92_v17  ;;  %v782_v56 = vpack.c.bf16 %v1042_v49, %v1040_v48  ;;  %v790_v57 = vpack.c.bf16 %v1046_v52, %v1044_v51  ;;  %v1068_v2 = vld [vmem:[#allocation6 + $0xb0] sm:$0xff] }
  0x32   :  { %v118_v58 = vcombine.high %v110_v50, %v110_v50  ;;  %v1070_v3 = vld [vmem:[#allocation6 + $0xf0] sm:$0xff]  ;;  %v784_v5 = vpack.c.bf16 %v1062_v63, %v1060_v62  ;;  %v422_v17 = vmul.f32 %v991_v15, %v991_v15  ;;  %v796_v14 = vpack.c.bf16 %v420_v11, %v412_v10 }
  0x33   :  { %769 = vmatpush1.bf16.xpose.msra.mxu0 %v768_v35  ;;  %v119_v59 = vcombine.high %v117_v53, %v117_v53  ;;  %v792_v6 = vpack.c.bf16 %v1070_v3, %v1068_v2  ;;  %v798_v26 = vpack.c.bf16 %v437_v20, %v429_v18  ;;  %v428_v15 = vmul.f32 %v1006_v23, %v1006_v23 }
  0x34   :  { %777 = vmatpush1.bf16.xpose.msra.mxu1 %v776_v37  ;;  %779 = vmatprep.subr.bf16.mxu0 %v778_v39  ;;  %v804_v25 = vpack.c.bf16 %v422_v17, %v414_v13  ;;  %v436_v16 = vmul.f32 %v1008_v24, %v1008_v24  ;;  %v430_v19 = vmul.f32 %v1012_v27, %v1012_v27  ;;  %v915_v23 = vmov 1.0  }
  0x35   :  { %787 = vmatprep.subr.bf16.mxu1 %v786_v40  ;;  %v438_v21 = vmul.f32 %v1014_v28, %v1014_v28  ;;  %v417_v22 = vmul.f32 %v1016_v30, %v1016_v30  ;;  %v425_v31 = vmul.f32 %v1018_v32, %v1018_v32  ;;  %v419_v24 = vmul.f32 %v1020_v33, %v1020_v33 }
  0x36   :  { %v427_v27 = vmul.f32 %v1022_v34, %v1022_v34  ;;  %v800_v35 = vpack.c.bf16 %v436_v16, %v428_v15  ;;  %v416_v30 = vmul.f32 %v1032_v44, %v1032_v44  ;;  %v424_v32 = vmul.f32 %v1034_v45, %v1034_v45 }
  0x37   :  { %v808_v28 = vpack.c.bf16 %v438_v21, %v430_v19  ;;  %v810_v36 = vpack.c.bf16 %v425_v31, %v417_v22  ;;  %v426_v33 = vmul.f32 %v1038_v47, %v1038_v47  ;;  %v433_v34 = vmul.f32 %v1040_v48, %v1040_v48 }
  0x38   :  { %v818_v37 = vpack.c.bf16 %v427_v27, %v419_v24  ;;  %v441_v39 = vmul.f32 %v1042_v49, %v1042_v49  ;;  %v435_v40 = vmul.f32 %v1044_v51, %v1044_v51  ;;  %v443_v41 = vmul.f32 %v1046_v52, %v1046_v52 }
  0x39   :  { %v812_v42 = vpack.c.bf16 %v424_v32, %v416_v30  ;;  %v440_v47 = vmul.f32 %v1062_v63, %v1062_v63  ;;  %v434_v48 = vmul.f32 %v1068_v2, %v1068_v2  ;;  %v442_v49 = vmul.f32 %v1070_v3, %v1070_v3 }
  0x3a   :  { %193 = vmatmul.mubr.f32.vlgmr.msra.gmra.mrb[0].mxu0 %v93_v29  ;;  %v806_v29 = vpack.c.bf16 %v439_v9, %v431_v7  ;;  %v814_v44 = vpack.c.bf16 %v441_v39, %v433_v34  ;;  %v822_v45 = vpack.c.bf16 %v443_v41, %v435_v40  ;;  %v916_v52 = vmov 0.0  }
  0x3b   :  { %263 = vmatmul.mubr.f32.vlgmr.msra.gmra.mrb[0].mxu1 %v100_v38  ;;  %781 = vmatpush1.bf16.xpose.msra.mxu0 %v780_v54  ;;  %v418_v38 = vmul.f32 %v1036_v46, %v1036_v46  ;;  %v432_v46 = vmul.f32 %v1060_v62, %v1060_v62  ;;  %v824_v51 = vpack.c.bf16 %v442_v49, %v434_v48 }
  0x3c   :  { %789 = vmatpush1.bf16.xpose.msra.mxu1 %v788_v55  ;;  %783 = vmatprep.subr.bf16.mxu0 %v782_v56  ;;  %46 = vst.msk [vmem:[#allocation8] sm:$0x3] %vm45_vm0, %v916_v52 }
  0x3d   :  { %791 = vmatprep.subr.bf16.mxu1 %v790_v57  ;;  %332 = vmatprep.mubr.f32.mxu0 %v118_v58  ;;  %v820_v43 = vpack.c.bf16 %v426_v33, %v418_v38  ;;  %48 = vst.msk [vmem:[#allocation2] sm:$0x1] %vm47_vm1, %v916_v52 }
  0x3e   :  { %402 = vmatprep.mubr.f32.mxu1 %v119_v59 }
  0x43   :  { %785 = vmatpush1.bf16.xpose.msra.mxu0 %v784_v5  ;;  %v83_v62 = vld [vmem:[#allocation8] sm:$0x3] }
  0x44   :  { %793 = vmatpush1.bf16.xpose.msra.mxu1 %v792_v6  ;;  %795 = vmatprep.subr.bf16.mxu0 %v794_v8  ;;  %v411_v17 = vld [vmem:[#allocation2] sm:$0x1] }
  0x45   :  { %803 = vmatprep.subr.bf16.mxu1 %v802_v12 }
  0x4a   :  { %333 = vmatmul.mubr.f32.vlgmr.msra.gmra.mrb[2].mxu0 %v110_v50  ;;  %v816_v50 = vpack.c.bf16 %v440_v47, %v432_v46 }
  0x4b   :  { %797 = vmatpush1.bf16.xpose.msra.mxu0 %v796_v14  ;;  %403 = vmatmul.mubr.f32.vlgmr.msra.gmra.mrb[2].mxu1 %v117_v53  ;;  %v730_v14 = vld [vmem:[%s1156_s2] sm:$0x3] }
  0x4c   :  { %805 = vmatpush1.bf16.xpose.msra.mxu1 %v804_v25  ;;  %799 = vmatprep.subr.bf16.mxu0 %v798_v26  ;;  %v737_v25 = vsub.s32 0, %v969_v4  ;;  %v742_v26 = vsub.s32 1, %v969_v4 }
  0x4d   :  { %807 = vmatprep.subr.bf16.mxu1 %v806_v29  ;;  %508 = vmatprep.mubr.f32.mxu0 %v915_v23 }
  0x4e   :  { %578 = vmatprep.mubr.f32.mxu1 %v915_v23  ;;  %v743_v19 = vrot.slane %v730_v14, %v742_v26 }
  0x53   :  { %801 = vmatpush1.bf16.xpose.msra.mxu0 %v800_v35 }
  0x54   :  { %809 = vmatpush1.bf16.xpose.msra.mxu1 %v808_v28  ;;  %811 = vmatprep.subr.bf16.mxu0 %v810_v36 }
  0x55   :  { %819 = vmatprep.subr.bf16.mxu1 %v818_v37 }
  0x5a   :  { %509 = vmatmul.mubr.f32.vlgmr.msra.gmra.mrb[4].mxu0 %v915_v23 }
  0x5b   :  { %579 = vmatmul.mubr.f32.vlgmr.msra.gmra.mrb[4].mxu1 %v915_v23  ;;  %813 = vmatpush1.bf16.xpose.msra.mxu0 %v812_v42 }
  0x5c   :  { %821 = vmatpush1.bf16.xpose.msra.mxu1 %v820_v43  ;;  %815 = vmatprep.subr.bf16.mxu0 %v814_v44 }
  0x5d   :  { %823 = vmatprep.subr.bf16.mxu1 %v822_v45  ;;  %648 = vmatprep.mubr.f32.mxu0 %v915_v23 }
  0x5e   :  { %718 = vmatprep.mubr.f32.mxu1 %v915_v23 }
  0x63   :  { %817 = vmatpush1.bf16.xpose.msra.mxu0 %v816_v50 }
  0x64   :  { %825 = vmatpush1.bf16.xpose.msra.mxu1 %v824_v51 }
  0x6a   :  { %649 = vmatmul.mubr.f32.vlgmr.msra.gmra.mrb[6].mxu0 %v915_v23 }
  0x6b   :  { %719 = vmatmul.mubr.f32.vlgmr.msra.gmra.mrb[6].mxu1 %v915_v23 }
 0x10d   :  { %v194_v53 = vpop.f32.mrb[0].mxu0 }
 0x10e   :  { %v196_v54 = vpop.f32.mrb[1].mxu0  ;;  %v264_v55 = vpop.f32.mrb[0].mxu1 }
 0x10f   :  { %v265_v56 = vadd.f32 %v264_v55, %v194_v53  ;;  %v266_v57 = vpop.f32.mrb[1].mxu1 }
 0x11d   :  { %v334_v58 = vpop.f32.mrb[2].mxu0 }
 0x11e   :  { %v335_v59 = vadd.f32 %v334_v58, %v265_v56  ;;  %v336_v60 = vpop.f32.mrb[3].mxu0  ;;  %v404_v61 = vpop.f32.mrb[2].mxu1 }
 0x11f   :  { %v406_v63 = vpop.f32.mrb[3].mxu1 }
 0x120   :  { %v405_v0 = vadd.f32 %v404_v61, %v335_v59 }
 0x122   :  { %v408_v1 = vadd.f32 %v405_v0, %v83_v62 }
 0x124   :  { %410 = vst.msk [vmem:[#allocation8] sm:$0x3] %vm45_vm0, %v408_v1 }
 0x12b   :  { %v734_v21 = vld [vmem:[#allocation8] sm:$0x3] }
 0x12d   :  { %v510_v2 = vpop.f32.mrb[4].mxu0 }
 0x12e   :  { %v512_v3 = vpop.f32.mrb[5].mxu0  ;;  %v580_v5 = vpop.f32.mrb[4].mxu1 }
 0x12f   :  { %v581_v6 = vadd.f32 %v580_v5, %v510_v2  ;;  %v582_v8 = vpop.f32.mrb[5].mxu1 }
 0x13d   :  { %v650_v12 = vpop.f32.mrb[6].mxu0 }
 0x13e   :  { %v651_v10 = vadd.f32 %v650_v12, %v581_v6  ;;  %v652_v11 = vpop.f32.mrb[7].mxu0  ;;  %v720_v13 = vpop.f32.mrb[6].mxu1 }
 0x13f   :  { %v722_v18 = vpop.f32.mrb[7].mxu1 }
 0x140   :  { %v721_v20 = vadd.f32 %v720_v13, %v651_v10 }
 0x142   :  { %v724_v7 = vadd.f32 %v721_v20, %v411_v17 }
 0x144   :  { %726 = vst.msk [vmem:[#allocation2] sm:$0x1] %vm47_vm1, %v724_v7 }
 0x14b   :  { %v731_v9 = vld [vmem:[#allocation2] sm:$0x1] }
 0x14c   :  { %836 = vrsqrt.f32 %v731_v9 }
 0x156   :  { %v837_v29 = vpop.eup %836 }
 0x157   :  { %v733_v15 = vmul.f32 %v837_v29, %v730_v14 }
 0x159   :  { %v738_v16 = vrot.slane %v733_v15, %v737_v25 }
 0x15b   :  { %v739_v22 = vmul.f32 %v738_v16, %v734_v21 }
 0x15d   :  { %v744_v31 = vadd.f32 %v743_v19, %v739_v22 }
 0x15f   :  { %745 = vst.msk [vmem:[#allocation8] sm:$0x3] %vm45_vm0, %v744_v31 }
 0x160   :  { %893 = shalt.err (!%p890_p6)
}
 0x161   :  { %s894_s15 = scalar_lea.hbm %s1157_s3, 32 }
 0x162   :  { %p895_p7 = scmp.ne.s32.totalorder %s1157_s3, %s894_s15  ;;  %p898_p8 = scmp.lt.u32.totalorder %s894_s15, %s1157_s3 }
 0x164   :  { %p900_p9 = pnand %p898_p8, %p895_p7 }
 0x166   :  { %903 = shalt.err (!%p900_p9)
}
 0x167   :  { %755 = dma.vmem_to_hbm [thread:$0]  %s753_s12, 32, %s1157_s3, [#allocation5]  }
 0x168   :  { %908 = dma.done.wait [#allocation5], 32  }
 0x169   :  { %909 = vsyncadd [#allocation5], 4294967264 }
 0x16a   :  { %759 = vsyncpa [#allocation4], 1 }
 0x16b   :  { %760 = vsyncpa [#allocation7], 1 }
 0x16c   :  { %761 = vsyncpa [#allocation5], 1 }

</bundles_post_ra>
